<compile_context>
chip_gen: v5e
topology: v5e:2x2
jax: 0.10.0
libtpu: 0.0.40
codegen_flags: <defaults>
</compile_context>

<pallas_src>
import functools

import jax
import jax.numpy as jnp
import numpy as np
from jax.experimental import pallas as pl
from jax.experimental.pallas import tpu as pltpu


def _expand_kernel(x_ref, o_ref, *, gain, mm_dtype, m_chunk, strided_store):
    """One (batch, channel-tile) step of depth-to-space.

    x_ref: (gain*gain, M, W)  -- the gain^2 source strips, M = TILE_C*H rows
    o_ref: (M*gain, W*gain)   -- the corresponding interleaved output strip
    """
    s = gain
    _, M, W = x_ref.shape

    # Column (lane) interleave matrices: P[s2][w, w*s + s2] = 1, else 0.
    col = jax.lax.broadcasted_iota(jnp.int32, (W, W * s), 1)
    row = jax.lax.broadcasted_iota(jnp.int32, (W, W * s), 0)
    p_mats = [(col == row * s + s2).astype(mm_dtype) for s2 in range(s)]

    for m0 in range(0, M, m_chunk):  # static chunking: bounds live vregs
        mc = min(m_chunk, M - m0)
        if not strided_store:
            # Fallback row-interleave matrices: Q[s1][m*s + s1, m] = 1.
            rq = jax.lax.broadcasted_iota(jnp.int32, (mc * s, mc), 0)
            cq = jax.lax.broadcasted_iota(jnp.int32, (mc * s, mc), 1)
        for s1 in range(s):
            z = None  # no zero-init + add: first dot assigns
            for s2 in range(s):
                plane = x_ref[s1 * s + s2, m0:m0 + mc, :].astype(mm_dtype)
                t = jnp.dot(plane, p_mats[s2],
                            preferred_element_type=jnp.float32)  # (mc, W*s)
                z = t if z is None else z + t
            if strided_store:
                # Row (sublane) interleave = cheap strided store, no 2nd matmul.
                o_ref[pl.ds(m0 * s + s1, mc, stride=s), :] = z.astype(o_ref.dtype)
            else:
                # Compatibility path: MXU row interleave, accumulated in the
                # output VMEM block rather than in registers.
                q = (rq == cq * s + s1).astype(mm_dtype)
                contrib = jnp.dot(q, z.astype(mm_dtype),
                                  preferred_element_type=jnp.float32)
                sl = slice(m0 * s, (m0 + mc) * s)
                if s1 == 0:
                    o_ref[sl, :] = contrib.astype(o_ref.dtype)
                else:
                    o_ref[sl, :] += contrib.astype(o_ref.dtype)


def _pick_tile_c(c_out, H, W, s, itemsize, *, m_cap=512, vmem_budget=8 << 20):
    """Largest channel tile with 8-aligned block rows, a modest matmul M dim,
    and double-buffered (in + out) blocks well under the v7x scoped VMEM limit."""
    candidates = [
        t for t in range(1, c_out + 1)
        if c_out % t == 0
        and (t == c_out or (t * H) % 8 == 0)          # (8, 128) block-shape rule
        and t * H <= m_cap                            # bound live z vregs
        and 4 * (s * s) * t * H * W * itemsize <= vmem_budget
    ]
    # TODO(synk): if no candidate fits (odd H with huge C'*H), this falls back
    #             to the full channel extent, which is always a legal block.
    return max(candidates) if candidates else c_out


def _expand_pallas_impl(x, gain, *, strided_store):
    N, C, H, W = x.shape
    s = int(gain)
    c_out = C // (s * s)
    tile_c = _pick_tile_c(c_out, H, W, s, x.dtype.itemsize)
    M = tile_c * H

    # bf16 stays bf16 on the MXU (single pass); everything else runs as f32.
    mm_dtype = jnp.bfloat16 if x.dtype == jnp.bfloat16 else jnp.float32

    # Free row-major view: channel index (s1*s + s2)*C' + c  ->  axes (g, c*H+h).
    x_in = x.reshape(N, s * s, c_out * H, W)

    cost = pl.CostEstimate(
        flops=int(2 * N * C * H * W * (W * s)),
        transcendentals=0,
        bytes_accessed=int(2 * x.size * x.dtype.itemsize),
    )

    kernel = functools.partial(
        _expand_kernel, gain=s, mm_dtype=mm_dtype,
        m_chunk=min(M, 256), strided_store=strided_store)

    out2d = pl.pallas_call(
        kernel,
        out_shape=jax.ShapeDtypeStruct((N, c_out * H * s, W * s), x.dtype),
        grid=(N, c_out // tile_c),
        in_specs=[pl.BlockSpec((None, s * s, M, W), lambda n, c: (n, 0, c, 0))],
        out_specs=pl.BlockSpec((None, M * s, W * s), lambda n, c: (n, c, 0)),
        compiler_params=pltpu.CompilerParams(
            dimension_semantics=("parallel", "parallel")),
        cost_estimate=cost,
    )(x_in)

    # Free row-major reshape back to the final NCHW layout.
    return out2d.reshape(N, c_out, H * s, W * s)


_STRIDED_STORE_OK = True  # flipped off once if the toolchain rejects strided vst


def expand_pallas(x, gain=2):
    """Depth-to-space: (N, C, H, W) -> (N, C // gain**2, H*gain, W*gain)."""
    global _STRIDED_STORE_OK
    N, C, H, W = x.shape
    s = int(gain)
    if s == 1:
        return x
    assert C % (s * s) == 0, "C must be divisible by gain**2"
    assert jnp.issubdtype(x.dtype, jnp.floating), (
        "expand_pallas routes data through the MXU; integer dtypes are not "
        "supported (no integer MXU path on v7x).")
    # TODO(synk): add a non-MXU pure-copy path for integer dtypes if needed.
    if _STRIDED_STORE_OK:
        try:
            return _expand_pallas_impl(x, gain=s, strided_store=True)
        except Exception:
            # Toolchain without sublane-strided vector stores: fall back to the
            # MXU row-interleave (VMEM-accumulated) formulation.
            _STRIDED_STORE_OK = False
    return _expand_pallas_impl(x, gain=s, strided_store=False)


# ----------------------- pure-JAX reference (NCHW) -----------------------
def expand_ref(x, gain=2):
    N, C, H, W = x.shape
    s = gain
    y = x.reshape(N, s, s, C // (s * s), H, W)
    y = jnp.transpose(y, (0, 3, 4, 1, 5, 2))
    return y.reshape(N, C // (s * s), H * s, W * s)


if __name__ == "__main__":
    key = jax.random.PRNGKey(0)
    cases = [
        # (shape, dtype, gain)
        ((2, 4, 16, 16), jnp.float32, 2),    # spec-sized example (W*gain < 128)
        ((2, 4, 16, 64), jnp.float32, 2),    # lane-dense output (W*gain = 128)
        ((2, 16, 16, 64), jnp.bfloat16, 2),  # bf16 path + channel batching
        ((1, 16, 8, 32), jnp.float32, 4),    # gain = 4
    ]
    for shape, dtype, gain in cases:
        key, sub = jax.random.split(key)
        x = jax.random.normal(sub, shape, jnp.float32).astype(dtype)
        out = jax.block_until_ready(expand_pallas(x, gain=gain))
        ref = jax.block_until_ready(expand_ref(x, gain=gain))
        # Pure permutation: every output element is 1.0 * one input element plus
        # exact zeros (even under the f32 multi-pass MXU decomposition), so the
        # result must match bit-exactly.
        np.testing.assert_array_equal(np.asarray(out), np.asarray(ref))

    print("KERNEL_OK")
</pallas_src>

<mosaic_0001>
module attributes {stable_mosaic.version = 11 : i64} {
  func.func @_expand_kernel(%arg0: i32, %arg1: i32, %arg2: memref<1x4x16x16xf32, #tpu.memory_space<vmem>>, %arg3: memref<1x32x32xf32, #tpu.memory_space<vmem>>) attributes {dimension_semantics = [#tpu.dimension_semantics<parallel>, #tpu.dimension_semantics<parallel>], iteration_bounds = array<i64: 2, 1>, scalar_prefetch = 0 : i64, scratch_operands = 0 : i64, tpu.core_type = #tpu.core_type<tc>, window_params = [{transform_indices = @transform_0, window_bounds = array<i64: 1, 4, 16, 16>}, {transform_indices = @transform_1, window_bounds = array<i64: 1, 32, 32>}]} {
    %0 = tpu.iota {dimensions = array<i32: 1>} : vector<16x32xi32>
    %1 = tpu.iota {dimensions = array<i32: 0>} : vector<16x32xi32>
    %c2_i32 = arith.constant 2 : i32
    %2 = vector.broadcast %c2_i32 : i32 to vector<16x32xi32>
    %3 = arith.muli %1, %2 : vector<16x32xi32>
    %c0_i32 = arith.constant 0 : i32
    %4 = vector.broadcast %c0_i32 : i32 to vector<16x32xi32>
    %5 = arith.addi %3, %4 : vector<16x32xi32>
    %6 = arith.cmpi eq, %0, %5 : vector<16x32xi32>
    %7 = arith.extui %6 : vector<16x32xi1> to vector<16x32xi32>
    %8 = arith.sitofp %7 : vector<16x32xi32> to vector<16x32xf32>
    %c2_i32_0 = arith.constant 2 : i32
    %9 = vector.broadcast %c2_i32_0 : i32 to vector<16x32xi32>
    %10 = arith.muli %1, %9 : vector<16x32xi32>
    %c1_i32 = arith.constant 1 : i32
    %11 = vector.broadcast %c1_i32 : i32 to vector<16x32xi32>
    %12 = arith.addi %10, %11 : vector<16x32xi32>
    %13 = arith.cmpi eq, %0, %12 : vector<16x32xi32>
    %14 = arith.extui %13 : vector<16x32xi1> to vector<16x32xi32>
    %15 = arith.sitofp %14 : vector<16x32xi32> to vector<16x32xf32>
    %c0 = arith.constant 0 : index
    %c0_1 = arith.constant 0 : index
    %c0_2 = arith.constant 0 : index
    %c0_3 = arith.constant 0 : index
    %16 = vector.load %arg2[%c0, %c0_1, %c0_2, %c0_3] : memref<1x4x16x16xf32, #tpu.memory_space<vmem>>, vector<1x1x16x16xf32>
    %17 = vector.shape_cast %16 : vector<1x1x16x16xf32> to vector<16x16xf32>
    %cst = arith.constant dense<0.000000e+00> : vector<16x32xf32>
    %18 = tpu.matmul %17, %8, %cst {dimension_numbers = #tpu.dot_dimension_numbers<[1], [0], [0], [1], [0, 0, 1, 1], [], []>} : vector<16x16xf32>, vector<16x32xf32>, vector<16x32xf32> -> vector<16x32xf32>
    %c0_4 = arith.constant 0 : index
    %c1 = arith.constant 1 : index
    %c0_5 = arith.constant 0 : index
    %c0_6 = arith.constant 0 : index
    %19 = vector.load %arg2[%c0_4, %c1, %c0_5, %c0_6] : memref<1x4x16x16xf32, #tpu.memory_space<vmem>>, vector<1x1x16x16xf32>
    %20 = vector.shape_cast %19 : vector<1x1x16x16xf32> to vector<16x16xf32>
    %cst_7 = arith.constant dense<0.000000e+00> : vector<16x32xf32>
    %21 = tpu.matmul %20, %15, %cst_7 {dimension_numbers = #tpu.dot_dimension_numbers<[1], [0], [0], [1], [0, 0, 1, 1], [], []>} : vector<16x16xf32>, vector<16x32xf32>, vector<16x32xf32> -> vector<16x32xf32>
    %22 = arith.addf %18, %21 : vector<16x32xf32>
    %c0_8 = arith.constant 0 : index
    %c0_9 = arith.constant 0 : index
    %c0_10 = arith.constant 0 : index
    %23 = tpu.strided_load %arg3[%c0_8, %c0_9, %c0_10] {strides = array<i32: 1, 2, 1>} : memref<1x32x32xf32, #tpu.memory_space<vmem>>, vector<1x16x32xf32>
    %24 = vector.shape_cast %23 : vector<1x16x32xf32> to vector<16x32xf32>
    %25 = vector.shape_cast %22 : vector<16x32xf32> to vector<1x16x32xf32>
    tpu.strided_store %arg3[%c0_8, %c0_9, %c0_10], %25 {strides = array<i32: 1, 2, 1>} : memref<1x32x32xf32, #tpu.memory_space<vmem>>, vector<1x16x32xf32>
    %c0_11 = arith.constant 0 : index
    %c2 = arith.constant 2 : index
    %c0_12 = arith.constant 0 : index
    %c0_13 = arith.constant 0 : index
    %26 = vector.load %arg2[%c0_11, %c2, %c0_12, %c0_13] : memref<1x4x16x16xf32, #tpu.memory_space<vmem>>, vector<1x1x16x16xf32>
    %27 = vector.shape_cast %26 : vector<1x1x16x16xf32> to vector<16x16xf32>
    %cst_14 = arith.constant dense<0.000000e+00> : vector<16x32xf32>
    %28 = tpu.matmul %27, %8, %cst_14 {dimension_numbers = #tpu.dot_dimension_numbers<[1], [0], [0], [1], [0, 0, 1, 1], [], []>} : vector<16x16xf32>, vector<16x32xf32>, vector<16x32xf32> -> vector<16x32xf32>
    %c0_15 = arith.constant 0 : index
    %c3 = arith.constant 3 : index
    %c0_16 = arith.constant 0 : index
    %c0_17 = arith.constant 0 : index
    %29 = vector.load %arg2[%c0_15, %c3, %c0_16, %c0_17] : memref<1x4x16x16xf32, #tpu.memory_space<vmem>>, vector<1x1x16x16xf32>
    %30 = vector.shape_cast %29 : vector<1x1x16x16xf32> to vector<16x16xf32>
    %cst_18 = arith.constant dense<0.000000e+00> : vector<16x32xf32>
    %31 = tpu.matmul %30, %15, %cst_18 {dimension_numbers = #tpu.dot_dimension_numbers<[1], [0], [0], [1], [0, 0, 1, 1], [], []>} : vector<16x16xf32>, vector<16x32xf32>, vector<16x32xf32> -> vector<16x32xf32>
    %32 = arith.addf %28, %31 : vector<16x32xf32>
    %c0_19 = arith.constant 0 : index
    %c1_20 = arith.constant 1 : index
    %c0_21 = arith.constant 0 : index
    %33 = tpu.strided_load %arg3[%c0_19, %c1_20, %c0_21] {strides = array<i32: 1, 2, 1>} : memref<1x32x32xf32, #tpu.memory_space<vmem>>, vector<1x16x32xf32>
    %34 = vector.shape_cast %33 : vector<1x16x32xf32> to vector<16x32xf32>
    %35 = vector.shape_cast %32 : vector<16x32xf32> to vector<1x16x32xf32>
    tpu.strided_store %arg3[%c0_19, %c1_20, %c0_21], %35 {strides = array<i32: 1, 2, 1>} : memref<1x32x32xf32, #tpu.memory_space<vmem>>, vector<1x16x32xf32>
    return
  }
  func.func @transform_0(%arg0: i32, %arg1: i32) -> (i32, i32, i32, i32) {
    %c0_i32 = arith.constant 0 : i32
    %c0_i32_0 = arith.constant 0 : i32
    %c0_i32_1 = arith.constant 0 : i32
    return %arg0, %c0_i32, %arg1, %c0_i32_0 : i32, i32, i32, i32
  }
  func.func @transform_1(%arg0: i32, %arg1: i32) -> (i32, i32, i32) {
    %c0_i32 = arith.constant 0 : i32
    %c0_i32_0 = arith.constant 0 : i32
    return %arg0, %arg1, %c0_i32 : i32, i32, i32
  }
}

module attributes {stable_mosaic.version = 11 : i64} {
  func.func @_expand_kernel(%arg0: i32, %arg1: i32, %arg2: memref<1x4x16x16xf32, #tpu.memory_space<vmem>>, %arg3: memref<1x32x32xf32, #tpu.memory_space<vmem>>) attributes {dimension_semantics = [#tpu.dimension_semantics<parallel>, #tpu.dimension_semantics<parallel>], iteration_bounds = array<i64: 2, 1>, scalar_prefetch = 0 : i64, scratch_operands = 0 : i64, tpu.core_type = #tpu.core_type<tc>, window_params = [{transform_indices = @transform_0, window_bounds = array<i64: 1, 4, 16, 16>}, {transform_indices = @transform_1, window_bounds = array<i64: 1, 32, 32>}]} {
    %0 = tpu.iota {dimensions = array<i32: 1>} : vector<16x32xi32>
    %1 = tpu.iota {dimensions = array<i32: 0>} : vector<16x32xi32>
    %c2_i32 = arith.constant 2 : i32
    %2 = vector.broadcast %c2_i32 : i32 to vector<16x32xi32>
    %3 = arith.muli %1, %2 : vector<16x32xi32>
    %c0_i32 = arith.constant 0 : i32
    %4 = vector.broadcast %c0_i32 : i32 to vector<16x32xi32>
    %5 = arith.addi %3, %4 : vector<16x32xi32>
    %6 = arith.cmpi eq, %0, %5 : vector<16x32xi32>
    %7 = arith.extui %6 : vector<16x32xi1> to vector<16x32xi32>
    %8 = arith.sitofp %7 : vector<16x32xi32> to vector<16x32xf32>
    %c2_i32_0 = arith.constant 2 : i32
    %9 = vector.broadcast %c2_i32_0 : i32 to vector<16x32xi32>
    %10 = arith.muli %1, %9 : vector<16x32xi32>
    %c1_i32 = arith.constant 1 : i32
    %11 = vector.broadcast %c1_i32 : i32 to vector<16x32xi32>
    %12 = arith.addi %10, %11 : vector<16x32xi32>
    %13 = arith.cmpi eq, %0, %12 : vector<16x32xi32>
    %14 = arith.extui %13 : vector<16x32xi1> to vector<16x32xi32>
    %15 = arith.sitofp %14 : vector<16x32xi32> to vector<16x32xf32>
    %16 = tpu.iota {dimensions = array<i32: 0>} : vector<32x16xi32>
    %17 = tpu.iota {dimensions = array<i32: 1>} : vector<32x16xi32>
    %c0 = arith.constant 0 : index
    %c0_1 = arith.constant 0 : index
    %c0_2 = arith.constant 0 : index
    %c0_3 = arith.constant 0 : index
    %18 = vector.load %arg2[%c0, %c0_1, %c0_2, %c0_3] : memref<1x4x16x16xf32, #tpu.memory_space<vmem>>, vector<1x1x16x16xf32>
    %19 = vector.shape_cast %18 : vector<1x1x16x16xf32> to vector<16x16xf32>
    %cst = arith.constant dense<0.000000e+00> : vector<16x32xf32>
    %20 = tpu.matmul %19, %8, %cst {dimension_numbers = #tpu.dot_dimension_numbers<[1], [0], [0], [1], [0, 0, 1, 1], [], []>} : vector<16x16xf32>, vector<16x32xf32>, vector<16x32xf32> -> vector<16x32xf32>
    %c0_4 = arith.constant 0 : index
    %c1 = arith.constant 1 : index
    %c0_5 = arith.constant 0 : index
    %c0_6 = arith.constant 0 : index
    %21 = vector.load %arg2[%c0_4, %c1, %c0_5, %c0_6] : memref<1x4x16x16xf32, #tpu.memory_space<vmem>>, vector<1x1x16x16xf32>
    %22 = vector.shape_cast %21 : vector<1x1x16x16xf32> to vector<16x16xf32>
    %cst_7 = arith.constant dense<0.000000e+00> : vector<16x32xf32>
    %23 = tpu.matmul %22, %15, %cst_7 {dimension_numbers = #tpu.dot_dimension_numbers<[1], [0], [0], [1], [0, 0, 1, 1], [], []>} : vector<16x16xf32>, vector<16x32xf32>, vector<16x32xf32> -> vector<16x32xf32>
    %24 = arith.addf %20, %23 : vector<16x32xf32>
    %c2_i32_8 = arith.constant 2 : i32
    %25 = vector.broadcast %c2_i32_8 : i32 to vector<32x16xi32>
    %26 = arith.muli %17, %25 : vector<32x16xi32>
    %c0_i32_9 = arith.constant 0 : i32
    %27 = vector.broadcast %c0_i32_9 : i32 to vector<32x16xi32>
    %28 = arith.addi %26, %27 : vector<32x16xi32>
    %29 = arith.cmpi eq, %16, %28 : vector<32x16xi32>
    %30 = arith.extui %29 : vector<32x16xi1> to vector<32x16xi32>
    %31 = arith.sitofp %30 : vector<32x16xi32> to vector<32x16xf32>
    %cst_10 = arith.constant dense<0.000000e+00> : vector<32x32xf32>
    %32 = tpu.matmul %31, %24, %cst_10 {dimension_numbers = #tpu.dot_dimension_numbers<[1], [0], [0], [1], [0, 0, 1, 1], [], []>} : vector<32x16xf32>, vector<16x32xf32>, vector<32x32xf32> -> vector<32x32xf32>
    %c0_11 = arith.constant 0 : index
    %c0_12 = arith.constant 0 : index
    %c0_13 = arith.constant 0 : index
    %33 = vector.load %arg3[%c0_11, %c0_12, %c0_13] : memref<1x32x32xf32, #tpu.memory_space<vmem>>, vector<1x32x32xf32>
    %34 = vector.shape_cast %33 : vector<1x32x32xf32> to vector<32x32xf32>
    %35 = vector.shape_cast %32 : vector<32x32xf32> to vector<1x32x32xf32>
    tpu.vector_store %arg3[%c0_11, %c0_12, %c0_13], %35 {strides = array<i32>} : memref<1x32x32xf32, #tpu.memory_space<vmem>>, vector<1x32x32xf32>,
    %c0_14 = arith.constant 0 : index
    %c2 = arith.constant 2 : index
    %c0_15 = arith.constant 0 : index
    %c0_16 = arith.constant 0 : index
    %36 = vector.load %arg2[%c0_14, %c2, %c0_15, %c0_16] : memref<1x4x16x16xf32, #tpu.memory_space<vmem>>, vector<1x1x16x16xf32>
    %37 = vector.shape_cast %36 : vector<1x1x16x16xf32> to vector<16x16xf32>
    %cst_17 = arith.constant dense<0.000000e+00> : vector<16x32xf32>
    %38 = tpu.matmul %37, %8, %cst_17 {dimension_numbers = #tpu.dot_dimension_numbers<[1], [0], [0], [1], [0, 0, 1, 1], [], []>} : vector<16x16xf32>, vector<16x32xf32>, vector<16x32xf32> -> vector<16x32xf32>
    %c0_18 = arith.constant 0 : index
    %c3 = arith.constant 3 : index
    %c0_19 = arith.constant 0 : index
    %c0_20 = arith.constant 0 : index
    %39 = vector.load %arg2[%c0_18, %c3, %c0_19, %c0_20] : memref<1x4x16x16xf32, #tpu.memory_space<vmem>>, vector<1x1x16x16xf32>
    %40 = vector.shape_cast %39 : vector<1x1x16x16xf32> to vector<16x16xf32>
    %cst_21 = arith.constant dense<0.000000e+00> : vector<16x32xf32>
    %41 = tpu.matmul %40, %15, %cst_21 {dimension_numbers = #tpu.dot_dimension_numbers<[1], [0], [0], [1], [0, 0, 1, 1], [], []>} : vector<16x16xf32>, vector<16x32xf32>, vector<16x32xf32> -> vector<16x32xf32>
    %42 = arith.addf %38, %41 : vector<16x32xf32>
    %c2_i32_22 = arith.constant 2 : i32
    %43 = vector.broadcast %c2_i32_22 : i32 to vector<32x16xi32>
    %44 = arith.muli %17, %43 : vector<32x16xi32>
    %c1_i32_23 = arith.constant 1 : i32
    %45 = vector.broadcast %c1_i32_23 : i32 to vector<32x16xi32>
    %46 = arith.addi %44, %45 : vector<32x16xi32>
    %47 = arith.cmpi eq, %16, %46 : vector<32x16xi32>
    %48 = arith.extui %47 : vector<32x16xi1> to vector<32x16xi32>
    %49 = arith.sitofp %48 : vector<32x16xi32> to vector<32x16xf32>
    %cst_24 = arith.constant dense<0.000000e+00> : vector<32x32xf32>
    %50 = tpu.matmul %49, %42, %cst_24 {dimension_numbers = #tpu.dot_dimension_numbers<[1], [0], [0], [1], [0, 0, 1, 1], [], []>} : vector<32x16xf32>, vector<16x32xf32>, vector<32x32xf32> -> vector<32x32xf32>
    %c0_25 = arith.constant 0 : index
    %c0_26 = arith.constant 0 : index
    %c0_27 = arith.constant 0 : index
    %51 = vector.load %arg3[%c0_25, %c0_26, %c0_27] : memref<1x32x32xf32, #tpu.memory_space<vmem>>, vector<1x32x32xf32>
    %52 = vector.shape_cast %51 : vector<1x32x32xf32> to vector<32x32xf32>
    %53 = arith.addf %52, %50 : vector<32x32xf32>
    %c0_28 = arith.constant 0 : index
    %c0_29 = arith.constant 0 : index
    %c0_30 = arith.constant 0 : index
    %54 = vector.load %arg3[%c0_28, %c0_29, %c0_30] : memref<1x32x32xf32, #tpu.memory_space<vmem>>, vector<1x32x32xf32>
    %55 = vector.shape_cast %54 : vector<1x32x32xf32> to vector<32x32xf32>
    %56 = vector.shape_cast %53 : vector<32x32xf32> to vector<1x32x32xf32>
    tpu.vector_store %arg3[%c0_28, %c0_29, %c0_30], %56 {strides = array<i32>} : memref<1x32x32xf32, #tpu.memory_space<vmem>>, vector<1x32x32xf32>,
    return
  }
  func.func @transform_0(%arg0: i32, %arg1: i32) -> (i32, i32, i32, i32) {
    %c0_i32 = arith.constant 0 : i32
    %c0_i32_0 = arith.constant 0 : i32
    %c0_i32_1 = arith.constant 0 : i32
    return %arg0, %c0_i32, %arg1, %c0_i32_0 : i32, i32, i32, i32
  }
  func.func @transform_1(%arg0: i32, %arg1: i32) -> (i32, i32, i32) {
    %c0_i32 = arith.constant 0 : i32
    %c0_i32_0 = arith.constant 0 : i32
    return %arg0, %arg1, %c0_i32 : i32, i32, i32
  }
}

</mosaic_0001>

<bundles_post_ra>
// kernel: tpu_custom_call.1
= control target key start
LH: loop header
LB: loop body
LE: loop exit
PB: predicated region body
PF: predicated region fallthrough
CT: control target
= control target key end

     0   :  { %6 = vsyncpa [#allocation3], 0  ;;  %s807_s0 = inlined_call_operand.hbm [shape: f32[2,4,16,16], index: 0, kind: input, shape index: {}]   ;;  %s808_s1 = inlined_call_operand.hbm [shape: f32[2,32,32], index: 1, kind: output, shape index: {}]  }
   0x1   :  { %8 = vsyncpa [#allocation3 + $0x1], 0 }
   0x2   :  { %9 = vsyncpa [#allocation4], 0 }
   0x3   :  { %11 = vsyncpa [#allocation4 + $0x1], 0  ;;  %s660_s6 = smov 0   ;;  %s662_s7 = smov 0  }
   0x4   :  { %s664_s8 = smov 0   ;;  %s666_s9 = smov 0  }
   0x5   :  { %s668_s10 = smov 0   ;;  %s670_s11 = smov 0  }
   0x6 LB: > { %s418_s12 = sadd.s32 4294967295, %s643_s11   ;;  %s419_s13 = sadd.s32 4294967294, %s643_s11   ;;  %s643_s11 = sphi %s670_s11, %s17_s11   ;;  %s639_s10 = sphi %s668_s10, %s819_s10   ;;  %s635_s9 = sphi %s666_s9, %s818_s9   ;;  %s631_s8 = sphi %s664_s8, %s817_s8   ;;  %s627_s7 = sphi %s662_s7, %s816_s7   ;;  %s623_s6 = sphi %s660_s6, %s815_s6  }
   0x7   : > { %s29_s14 = sadd.s32 1, %s639_s10  ;;  %s38_s15 = sadd.s32 1, %s631_s8 }
   0x8   : > { %p31_p0 = scmp.ge.s32.totalorder %s29_s14, 2  ;;  %p45_p1 = scmp.ne.s32.totalorder %s631_s8, %s627_s7 }
   0x9   : > { %p46_p2 = scmp.eq.s32.totalorder %s643_s11, 0  ;;  %p51_p3 = scmp.ne.s32.totalorder %s627_s7, %s623_s6 }
   0xa   : > { %s821_s14 = smov (%p31_p0, %s29_s14), 0  ;;  %p52_p5 = scmp.eq.s32.totalorder %s418_s12, 0 }
   0xb   : > { %p701_p4 = por %p46_p2, %p45_p1  ;;  %s33_s17 = ssub.s32 %s639_s10, %s821_s14 }
   0xc   : > { %p77_p6 = scmp.eq.s32.totalorder %s418_s12, 1  ;;  %p36_p7 = scmp.eq.s32.totalorder %s33_s17, 0 }
   0xd   : > { %p707_p8 = por %p52_p5, %p51_p3  ;;  %p83_p10 = scmp.eq.s32.totalorder %s419_s13, 1 }
   0xe   : > { %p711_p9 = por %p77_p6, %p45_p1  ;;  %p421_p12 = scmp.ge.s32.totalorder %s643_s11, 2 }
   0xf   : > { %s716_s20 = scalar_select %p36_p7, %s631_s8, %s38_s15  }
  0x10   : > { %p718_p11 = por %p83_p10, %p51_p3  ;;  %p476_p13 = scmp.lt.s32.totalorder %s643_s11, 2 }
  0x11   : > { %s103_s22 = sand.u32 1, %s631_s8   ;;  %s462_s24 = sshll.u32 %s639_s10, 6 }
  0x12   : > { %s422_s23 = sshll.u32 %s103_s22, 6  ;;  %s114_s27 = scalar_lea.hbm %s807_s0, %s462_s24 }
  0x13   : > { %s107_s28 = scalar_lea.vmem [#allocation2], %s422_s23  ;;  %s115_s30 = sshll.u32 %s114_s27, 4  ;;  %s116_s30 = int_to_ptr.hbm [resolvable:$true] %s115_s30 }
  0x14   : > { %s117_s29 = sshll.u32 %s107_s28, 4  ;;  %p469_p0 = pnand %p476_p13, %p701_p4  ;;  %s118_s29 = int_to_ptr.vmem [resolvable:$true] %s117_s29 }
  0x15   : > { %p425_p1 = scmp.ge.s32.totalorder %s643_s11, 1  ;;  %s104_s2 = scalar_lea.sflag [#allocation3], %s103_s22 }
  0x16   : > { %s645_s3 = smov 128   ;;  %s646_s4 = smov 8  }
  0x17   : > { %471 = dma.hbm_to_vmem [thread:$0]  (!%p469_p0), %s116_s30, 1024, %s118_s29, %s104_s2, %s645_s3, %s645_s3, %s646_s4  }
  0x18   : > { %p125_p2 = scmp.lt.s32.totalorder %s643_s11, 3 }
  0x1a   : > { %p126_p3 = pnand %p425_p1, %p125_p2 }
  0x1b   : > { %s734_s5 = sand.u32 (!%p126_p3), 1, %s627_s7  }
  0x1c   : > { %129 = sbr.rel (%p126_p3) target bundleno = 194 (0xc2), region = 24  ;;  %s426_s12 = sshll.u32 (!%p126_p3), %s734_s5, 6 }
  0x1d   : > { %s132_s13 = scalar_lea.sflag (!%p126_p3), [#allocation3], %s734_s5  ;;  %s738_s15 = scalar_lea.vmem (!%p126_p3), [#allocation2], %s426_s12 }
  0x21   : > { %614 = dma.done.wait (%p707_p8), %s132_s13, 1024  }
  0x22   : > { %616 = vsyncadd (%p707_p8), %s132_s13, 4294966272  ;;  %v157_v0 = vlaneseq  ;;  %v647_v9 = vmov 1.0   ;;  %vm183_vm2 = vcmask 130048   ;;  %v443_v10 = vld [vmem:[%s738_s15 + $0x20] sm:$0xff]  ;;  %v445_v11 = vld [vmem:[%s738_s15 + $0x30] sm:$0xff]  ;;  %s427_s16 = sshll.u32 %s734_s5, 5 }
  0x23   : > { %v432_v12 = vld [vmem:[%s738_s15 + $0x10] sm:$0xff]  ;;  %v178_v13 = vld [vmem:[%s738_s15] sm:$0xff]  ;;  %v444_v14 = vld [vmem:[%s738_s15 + $0x28] sm:$0xff]  ;;  %s154_s17 = scalar_lea.vmem [#allocation5], %s427_s16  ;;  %s463_s18 = sshll.u32 %s635_s9, 5 }
  0x24   : > { %v160_v1 = vshrl.u32 %v157_v0, 7  ;;  %v158_v2 = vand.u32 127, %v157_v0  ;;  %v446_v15 = vld [vmem:[%s738_s15 + $0x38] sm:$0xff]  ;;  %v179_v17 = vld [vmem:[%s738_s15 + $0x8] sm:$0xff]  ;;  %s327_s24 = scalar_lea.hbm %s808_s1, %s463_s18  ;;  %s328_s25 = sshll.u32 %s154_s17, 4  ;;  %s329_s25 = int_to_ptr.vmem [resolvable:$true] %s328_s25 }
  0x25   : > { %v433_v16 = vld [vmem:[%s738_s15 + $0x18] sm:$0xff]  ;;  %s330_s26 = sshll.u32 %s327_s24, 4  ;;  %s314_s9 = scalar_lea.sflag [#allocation4], %s734_s5  ;;  %s331_s26 = int_to_ptr.hbm [resolvable:$true] %s330_s26 }
  0x26   : > { %v161_v3 = vadd.s32 8, %v160_v1  ;;  %v162_v4 = vmul.u32 2, %v160_v1  ;;  %s575_s27 = sshra.s32 %s331_s26, 4  ;;  %s581_s2 = scalar_lea.hbm %s808_s1, 64  ;;  %s576_s27 = int_to_ptr.hbm [resolvable:$true] %s575_s27 }
  0x27   : > { %s577_s28 = scalar_lea.hbm %s576_s27, 32  ;;  %p582_p7 = scmp.lt.s32.totalorder %s576_s27, %s808_s1 }
  0x28   : > { %v163_v5 = vmul.u32 2, %v161_v3  ;;  %v170_v6 = vadd.s32 1, %v162_v4  ;;  %vm744_vm1 = vcmp.eq.s32.totalorder %v158_v2, %v162_v4  ;;  %p578_p4 = scmp.ne.s32.totalorder %s576_s27, %s577_s28  ;;  %p583_p8 = scmp.lt.s32.totalorder %s581_s2, %s577_s28 }
  0x2a   : > { %v171_v7 = vadd.s32 1, %v163_v5  ;;  %vm165_vm0 = vcmp.eq.s32.totalorder %v158_v2, %v163_v5  ;;  %vm172_vm4 = vcmp.eq.s32.totalorder %v158_v2, %v170_v6  ;;  %p579_p5 = pnand %p578_p4, %p711_p9  ;;  %p584_p10 = por %p583_p8, %p582_p7 }
  0x2b   : > { %451 = vmatpush.msk.msra.mxu3 %vm165_vm0, %v647_v9  ;;  %438 = vmatpush.msk.msra.mxu1 %vm165_vm0, %v647_v9 }
  0x2c   : > { %vm173_vm3 = vcmp.eq.s32.totalorder %v158_v2, %v171_v7  ;;  %p580_p6 = pneg %p579_p5 }
  0x2d   : > { %447 = vmatpush.msk.msra.mxu2 %vm173_vm3, %v647_v9  ;;  %452 = vmatpush.msk.msra.mxu3 %vm744_vm1, %v647_v9 }
  0x2e   : > { %453 = vmatmul.msk.f32.vlgmr.msra.gmra.mxu3 %vm183_vm2, %v443_v10  ;;  %434 = vmatpush.msk.msra.mxu0 %vm173_vm3, %v647_v9  ;;  %p585_p13 = pnand %p584_p10, %p580_p6 }
  0x2f   : > { %448 = vmatpush.msk.msra.mxu2 %vm172_vm4, %v647_v9  ;;  %439 = vmatpush.msk.msra.mxu1 %vm744_vm1, %v647_v9 }
  0x30   : > { %449 = vmatmul.msk.f32.vlgmr.msra.gmra.mxu2 %vm183_vm2, %v445_v11  ;;  %435 = vmatpush.msk.msra.mxu0 %vm172_vm4, %v647_v9 }
  0x31   : > { %436 = vmatmul.msk.f32.vlgmr.msra.gmra.mxu0 %vm183_vm2, %v432_v12  ;;  %440 = vmatmul.msk.f32.vlgmr.msra.gmra.mxu1 %vm183_vm2, %v178_v13 }
  0x36   : > { %454 = vmatmul.msk.f32.gmra.mxu3 %vm183_vm2, %v444_v14 }
  0x38   : > { %450 = vmatmul.msk.f32.gmra.mxu2 %vm183_vm2, %v446_v15 }
  0x39   : > { %437 = vmatmul.msk.f32.gmra.mxu0 %vm183_vm2, %v433_v16  ;;  %441 = vmatmul.msk.f32.gmra.mxu1 %vm183_vm2, %v179_v17 }
  0xae   : > { %v207_v18 = vpop.f32.mrf.mxu0  ;;  %v236_v19 = vpop.f32.mrf.mxu1 }
  0xaf   : > { %v237_v20 = vadd.f32 %v236_v19, %v207_v18 }
  0xb1   : > { %242 = vst [vmem:[%s154_s17] ss:$2 sm:$0xff] %v237_v20  ;;  %v303_v21 = vpop.f32.mrf.mxu3 }
  0xb3   : > { %v274_v22 = vpop.f32.mrf.mxu2 }
  0xb4   : > { %v304_v23 = vadd.f32 %v303_v21, %v274_v22 }
  0xb6   : > { %455 = vst [vmem:[%s154_s17 + $0x1] ss:$2 sm:$0xff] %v304_v23  ;;  %v210_v24 = vpop.f32.mrf.mxu0  ;;  %v239_v25 = vpop.f32.mrf.mxu1 }
  0xb7   : > { %v240_v26 = vadd.f32 %v239_v25, %v210_v24 }
  0xb9   : > { %442 = vst [vmem:[%s154_s17 + $0x10] ss:$2 sm:$0xff] %v240_v26  ;;  %v306_v27 = vpop.f32.mrf.mxu3 }
  0xbb   : > { %v277_v28 = vpop.f32.mrf.mxu2 }
  0xbc   : > { %v307_v29 = vadd.f32 %v306_v27, %v277_v28 }
  0xbe   : > { %456 = vst [vmem:[%s154_s17 + $0x11] ss:$2 sm:$0xff] %v307_v29 }
  0xbf   : > { %588 = shalt.err (!%p585_p13)
}
  0xc0   : > { %s648_s5 = smov 128   ;;  %s649_s12 = smov 8  }
  0xc1   : > { %466 = dma.vmem_to_hbm [thread:$0]  (%p711_p9), %s329_s25, 512, %s331_s26, %s314_s9, %s648_s5, %s648_s5, %s649_s12  }
  0xc2 PF: > { %s345_s13 = sand.u32 1, %s623_s6   ;;  %p473_p0 = pnand %p421_p12, %p718_p11 }
  0xc3   : > { %s346_s15 = scalar_lea.sflag [#allocation4], %s345_s13 }
  0xc4   : > { %p474_p1 = pneg %p473_p0 }
  0xc6   : > { %618 = dma.done.wait (%p474_p1), %s346_s15, 512  }
  0xc7   : > { %620 = vsyncadd (%p474_p1), %s346_s15, 4294966784  ;;  %s17_s11 = sadd.s32 1, %s643_s11   ;;  %s815_s6 = smov %s627_s7 }
  0xc8   : > { %p14_p2 = scmp.ge.s32.totalorder %s17_s11, 4   ;;  %s816_s7 = smov %s631_s8 }
  0xc9   : > { %s817_s8 = smov %s716_s20  ;;  %s818_s9 = smov %s639_s10 }
  0xca   : > { %s819_s10 = smov %s821_s14  ;;  %16 = sbr.rel (!%p14_p2) target bundleno = 6 (0x6), region = 75 }
  0xcf   :  { %352 = vsyncpa [#allocation3], 1 }
  0xd0   :  { %354 = vsyncpa [#allocation3 + $0x1], 1 }
  0xd1   :  { %355 = vsyncpa [#allocation4], 1 }
  0xd2   :  { %357 = vsyncpa [#allocation4 + $0x1], 1 }

// kernel: tpu_custom_call.1
= control target key start
LH: loop header
LB: loop body
LE: loop exit
PB: predicated region body
PF: predicated region fallthrough
CT: control target
= control target key end

     0   :  { %6 = vsyncpa [#allocation3], 0  ;;  %s979_s0 = inlined_call_operand.hbm [shape: f32[2,4,16,16], index: 0, kind: input, shape index: {}]   ;;  %s980_s1 = inlined_call_operand.hbm [shape: f32[2,32,32], index: 1, kind: output, shape index: {}]  }
   0x1   :  { %8 = vsyncpa [#allocation3 + $0x1], 0 }
   0x2   :  { %9 = vsyncpa [#allocation4], 0 }
   0x3   :  { %11 = vsyncpa [#allocation4 + $0x1], 0  ;;  %s795_s6 = smov 0   ;;  %s797_s7 = smov 0  }
   0x4   :  { %s799_s8 = smov 0   ;;  %s801_s9 = smov 0  }
   0x5   :  { %s803_s10 = smov 0   ;;  %s805_s11 = smov 0  }
   0x6 LB: > { %s538_s12 = sadd.s32 4294967295, %s777_s11   ;;  %s539_s13 = sadd.s32 4294967294, %s777_s11   ;;  %s777_s11 = sphi %s805_s11, %s17_s11   ;;  %s773_s10 = sphi %s803_s10, %s993_s10   ;;  %s769_s9 = sphi %s801_s9, %s992_s9   ;;  %s765_s8 = sphi %s799_s8, %s991_s8   ;;  %s761_s7 = sphi %s797_s7, %s990_s7   ;;  %s757_s6 = sphi %s795_s6, %s989_s6  }
   0x7   : > { %s29_s14 = sadd.s32 1, %s773_s10  ;;  %s38_s15 = sadd.s32 1, %s765_s8 }
   0x8   : > { %p31_p0 = scmp.ge.s32.totalorder %s29_s14, 2  ;;  %p45_p1 = scmp.ne.s32.totalorder %s765_s8, %s761_s7 }
   0x9   : > { %p46_p2 = scmp.eq.s32.totalorder %s777_s11, 0  ;;  %p51_p3 = scmp.ne.s32.totalorder %s761_s7, %s757_s6 }
   0xa   : > { %s995_s14 = smov (%p31_p0, %s29_s14), 0  ;;  %p52_p5 = scmp.eq.s32.totalorder %s538_s12, 0 }
   0xb   : > { %p836_p4 = por %p46_p2, %p45_p1  ;;  %s33_s17 = ssub.s32 %s773_s10, %s995_s14 }
   0xc   : > { %p77_p6 = scmp.eq.s32.totalorder %s538_s12, 1  ;;  %p36_p7 = scmp.eq.s32.totalorder %s33_s17, 0 }
   0xd   : > { %p842_p8 = por %p52_p5, %p51_p3  ;;  %p83_p10 = scmp.eq.s32.totalorder %s539_s13, 1 }
   0xe   : > { %p846_p9 = por %p77_p6, %p45_p1  ;;  %p541_p12 = scmp.ge.s32.totalorder %s777_s11, 2 }
   0xf   : > { %s851_s20 = scalar_select %p36_p7, %s765_s8, %s38_s15  }
  0x10   : > { %p853_p11 = por %p83_p10, %p51_p3  ;;  %p609_p13 = scmp.lt.s32.totalorder %s777_s11, 2 }
  0x11   : > { %s103_s22 = sand.u32 1, %s765_s8   ;;  %s595_s24 = sshll.u32 %s773_s10, 6 }
  0x12   : > { %s542_s23 = sshll.u32 %s103_s22, 6  ;;  %s114_s27 = scalar_lea.hbm %s979_s0, %s595_s24 }
  0x13   : > { %s107_s28 = scalar_lea.vmem [#allocation2], %s542_s23  ;;  %s115_s30 = sshll.u32 %s114_s27, 4  ;;  %s116_s30 = int_to_ptr.hbm [resolvable:$true] %s115_s30 }
  0x14   : > { %s117_s29 = sshll.u32 %s107_s28, 4  ;;  %p602_p0 = pnand %p609_p13, %p836_p4  ;;  %s118_s29 = int_to_ptr.vmem [resolvable:$true] %s117_s29 }
  0x15   : > { %p545_p1 = scmp.ge.s32.totalorder %s777_s11, 1  ;;  %s104_s2 = scalar_lea.sflag [#allocation3], %s103_s22 }
  0x16   : > { %s779_s3 = smov 128   ;;  %s780_s4 = smov 8  }
  0x17   : > { %604 = dma.hbm_to_vmem [thread:$0]  (!%p602_p0), %s116_s30, 1024, %s118_s29, %s104_s2, %s779_s3, %s779_s3, %s780_s4  }
  0x18   : > { %p125_p2 = scmp.lt.s32.totalorder %s777_s11, 3 }
  0x1a   : > { %p126_p3 = pnand %p545_p1, %p125_p2 }
  0x1b   : > { %s869_s5 = sand.u32 (!%p126_p3), 1, %s761_s7  }
  0x1c   : > { %129 = sbr.rel (%p126_p3) target bundleno = 363 (0x16b), region = 24  ;;  %s546_s12 = sshll.u32 (!%p126_p3), %s869_s5, 6 }
  0x1d   : > { %s132_s13 = scalar_lea.sflag (!%p126_p3), [#allocation3], %s869_s5  ;;  %s873_s15 = scalar_lea.vmem (!%p126_p3), [#allocation2], %s546_s12 }
  0x21   : > { %748 = dma.done.wait (%p842_p8), %s132_s13, 1024  }
  0x22   : > { %750 = vsyncadd (%p842_p8), %s132_s13, 4294966272  ;;  %v157_v0 = vlaneseq  ;;  %v781_v10 = vmov 1.0   ;;  %v180_v11 = vld [vmem:[%s873_s15] sm:$0xff]  ;;  %vm185_vm2 = vcmask 130048   ;;  %v552_v12 = vld [vmem:[%s873_s15 + $0x10] sm:$0xff]  ;;  %v782_v26 = vmov 0.0  }
  0x23   : > { %v181_v13 = vld [vmem:[%s873_s15 + $0x8] sm:$0xff]  ;;  %v553_v14 = vld [vmem:[%s873_s15 + $0x18] sm:$0xff]  ;;  %v572_v15 = vld [vmem:[%s873_s15 + $0x30] sm:$0xff]  ;;  %s547_s16 = sshll.u32 %s869_s5, 5  ;;  %vm298_vm13 = vcmask 261120   ;;  %s596_s18 = sshll.u32 %s769_s9, 5 }
  0x24   : > { %v879_v1 = vshrl.u32 %v157_v0, 7  ;;  %v158_v2 = vand.u32 127, %v157_v0  ;;  %v570_v16 = vld [vmem:[%s873_s15 + $0x20] sm:$0xff]  ;;  %v573_v17 = vld [vmem:[%s873_s15 + $0x38] sm:$0xff]  ;;  %v571_v18 = vld [vmem:[%s873_s15 + $0x28] sm:$0xff]  ;;  %s154_s17 = scalar_lea.vmem [#allocation5], %s547_s16  ;;  %s447_s24 = scalar_lea.hbm %s980_s1, %s596_s18 }
  0x25   : > { %s448_s25 = sshll.u32 %s154_s17, 4  ;;  %s450_s26 = sshll.u32 %s447_s24, 4  ;;  %s449_s25 = int_to_ptr.vmem [resolvable:$true] %s448_s25  ;;  %s451_s26 = int_to_ptr.hbm [resolvable:$true] %s450_s26 }
  0x26   : > { %v882_v3 = vadd.s32 8, %v879_v1  ;;  %v162_v4 = vmul.u32 2, %v879_v1  ;;  %v244_v22 = vmul.u32 2, %v158_v2  ;;  %v178_v32 = vadd.s32 16, %v879_v1  ;;  %s434_s27 = scalar_lea.sflag [#allocation4], %s869_s5  ;;  %s709_s9 = sshra.s32 %s451_s26, 4  ;;  %s710_s9 = int_to_ptr.hbm [resolvable:$true] %s709_s9 }
  0x27   : > { %v179_v39 = vadd.s32 24, %v879_v1  ;;  %s711_s28 = scalar_lea.hbm %s710_s9, 32  ;;  %s715_s2 = scalar_lea.hbm %s980_s1, 64 }
  0x28   : > { %v163_v5 = vmul.u32 2, %v882_v3  ;;  %v170_v6 = vadd.s32 1, %v162_v4  ;;  %vm890_vm1 = vcmp.eq.s32.totalorder %v158_v2, %v162_v4  ;;  %vm245_vm5 = vcmp.eq.s32.totalorder %v879_v1, %v244_v22  ;;  %p712_p4 = scmp.ne.s32.totalorder %s710_s9, %s711_s28  ;;  %p716_p7 = scmp.lt.s32.totalorder %s710_s9, %s980_s1 }
  0x29   : > { %v562_v27 = vsel %vm245_vm5, 1.0, %v782_v26  ;;  %vm246_vm6 = vcmp.eq.s32.totalorder %v882_v3, %v244_v22  ;;  %v367_v31 = vadd.s32 1, %v244_v22  ;;  %vm247_vm8 = vcmp.eq.s32.totalorder %v178_v32, %v244_v22  ;;  %p717_p8 = scmp.lt.s32.totalorder %s715_s2, %s711_s28 }
  0x2a   : > { %vm886_vm0 = vcmp.eq.s32.totalorder %v158_v2, %v163_v5  ;;  %v171_v9 = vadd.s32 1, %v163_v5  ;;  %vm172_vm4 = vcmp.eq.s32.totalorder %v158_v2, %v170_v6  ;;  %v563_v30 = vsel %vm246_vm6, 1.0, %v782_v26  ;;  %p713_p5 = pnand %p712_p4, %p846_p9 }
  0x2b   : > { %558 = vmatpush.msk.msra.mxu3 %vm886_vm0, %v781_v10  ;;  %vm368_vm7 = vcmp.eq.s32.totalorder %v879_v1, %v367_v31  ;;  %v564_v38 = vsel %vm247_vm8, 1.0, %v782_v26  ;;  %vm369_vm9 = vcmp.eq.s32.totalorder %v882_v3, %v367_v31  ;;  %vm248_vm10 = vcmp.eq.s32.totalorder %v179_v39, %v244_v22  ;;  %p718_p10 = por %p717_p8, %p716_p7 }
  0x2c   : > { %vm173_vm3 = vcmp.eq.s32.totalorder %v158_v2, %v171_v9  ;;  %v582_v37 = vsel %vm368_vm7, 1.0, %v782_v26  ;;  %v583_v40 = vsel %vm369_vm9, 1.0, %v782_v26  ;;  %v565_v41 = vsel %vm248_vm10, 1.0, %v782_v26  ;;  %p714_p6 = pneg %p713_p5 }
  0x2d   : > { %559 = vmatpush.msk.msra.mxu3 %vm890_vm1, %v781_v10  ;;  %554 = vmatpush.msk.msra.mxu0 %vm173_vm3, %v781_v10  ;;  %vm370_vm11 = vcmp.eq.s32.totalorder %v178_v32, %v367_v31  ;;  %vm371_vm12 = vcmp.eq.s32.totalorder %v179_v39, %v367_v31 }
  0x2e   : > { %560 = vmatmul.msk.f32.vlgmr.msra.gmra.mxu3 %vm185_vm2, %v180_v11  ;;  %v584_v42 = vsel %vm370_vm11, 1.0, %v782_v26  ;;  %v585_v43 = vsel %vm371_vm12, 1.0, %v782_v26  ;;  %p719_p13 = pnand %p718_p10, %p714_p6 }
  0x2f   : > { %574 = vmatpush.msk.msrb.mxu3 %vm173_vm3, %v781_v10  ;;  %555 = vmatpush.msk.msra.mxu0 %vm172_vm4, %v781_v10 }
  0x30   : > { %556 = vmatmul.msk.f32.vlgmr.msra.gmra.mxu0 %vm185_vm2, %v552_v12 }
  0x31   : > { %578 = vmatpush.msk.msrb.mxu0 %vm886_vm0, %v781_v10  ;;  %575 = vmatpush.msk.msrb.mxu3 %vm172_vm4, %v781_v10 }
  0x33   : > { %579 = vmatpush.msk.msrb.mxu0 %vm890_vm1, %v781_v10 }
  0x36   : > { %561 = vmatmul.msk.f32.gmra.mxu3 %vm185_vm2, %v181_v13 }
  0x38   : > { %557 = vmatmul.msk.f32.gmra.mxu0 %vm185_vm2, %v553_v14 }
  0x3e   : > { %576 = vmatmul.msk.f32.vlgmr.msrb.gmra.mxu3 %vm185_vm2, %v572_v15 }
  0x40   : > { %580 = vmatmul.msk.f32.vlgmr.msrb.gmra.mxu0 %vm185_vm2, %v570_v16 }
  0x46   : > { %577 = vmatmul.msk.f32.gmra.mxu3 %vm185_vm2, %v573_v17 }
  0x48   : > { %581 = vmatmul.msk.f32.gmra.mxu0 %vm185_vm2, %v571_v18 }
  0xad   : > { %v209_v19 = vpop.f32.mrf.mxu0 }
  0xb1   : > { %v238_v20 = vpop.f32.mrf.mxu3 }
  0xb2   : > { %v239_v25 = vadd.f32 %v238_v20, %v209_v19 }
  0xb5   : > { %v212_v21 = vpop.f32.mrf.mxu0 }
  0xb9   : > { %v241_v23 = vpop.f32.mrf.mxu3 }
  0xba   : > { %v242_v24 = vadd.f32 %v241_v23, %v212_v21 }
  0xbc   : > { %283 = vmatpush.msra.mxu2 %v242_v24 }
  0xbd   : > { %v361_v28 = vpop.f32.mrf.mxu0 }
  0xbe   : > { %284 = vmatpush.msra.mxu2 %v239_v25 }
  0xbf   : > { %566 = vmatmul.msk.f32.vlgmr.msra.gmra.mxu2 %vm185_vm2, %v562_v27 }
  0xc1   : > { %v332_v29 = vpop.f32.mrf.mxu3 }
  0xc2   : > { %v362_v36 = vadd.f32 %v361_v28, %v332_v29 }
  0xc5   : > { %v364_v33 = vpop.f32.mrf.mxu0 }
  0xc7   : > { %567 = vmatmul.msk.f32.gmra.mxu2 %vm185_vm2, %v563_v30 }
  0xc9   : > { %v335_v34 = vpop.f32.mrf.mxu3 }
  0xca   : > { %v365_v35 = vadd.f32 %v364_v33, %v335_v34 }
  0xcc   : > { %406 = vmatpush.msra.mxu1 %v365_v35 }
  0xce   : > { %407 = vmatpush.msra.mxu1 %v362_v36 }
  0xcf   : > { %586 = vmatmul.msk.f32.vlgmr.msra.gmra.mxu1 %vm185_vm2, %v582_v37  ;;  %568 = vmatmul.msk.f32.gmra.mxu2 %vm185_vm2, %v564_v38 }
  0xd7   : > { %587 = vmatmul.msk.f32.gmra.mxu1 %vm185_vm2, %v583_v40  ;;  %569 = vmatmul.msk.f32.gmra.mxu2 %vm185_vm2, %v565_v41 }
  0xdf   : > { %588 = vmatmul.msk.f32.gmra.mxu1 %vm185_vm2, %v584_v42 }
  0xe7   : > { %589 = vmatmul.msk.f32.gmra.mxu1 %vm185_vm2, %v585_v43 }
 0x142   : > { %v286_v44 = vpop.f32.mrf.mxu2 }
 0x143   : > { %299 = vst.msk [vmem:[%s154_s17] sm:$0xff] %vm298_vm13, %v286_v44 }
 0x14a   : > { %v289_v45 = vpop.f32.mrf.mxu2  ;;  %v421_v46 = vld [vmem:[%s154_s17] sm:$0xff] }
 0x14b   : > { %300 = vst.msk [vmem:[%s154_s17 + $0x8] sm:$0xff] %vm298_vm13, %v289_v45 }
 0x14c   : > { %v409_v47 = vpop.f32.mrf.mxu1 }
 0x14d   : > { %v425_v48 = vadd.f32 %v421_v46, %v409_v47 }
 0x14f   : > { %429 = vst.msk [vmem:[%s154_s17] sm:$0xff] %vm298_vm13, %v425_v48 }
 0x152   : > { %v292_v49 = vpop.f32.mrf.mxu2  ;;  %v422_v50 = vld [vmem:[%s154_s17 + $0x8] sm:$0xff] }
 0x153   : > { %301 = vst.msk [vmem:[%s154_s17 + $0x10] sm:$0xff] %vm298_vm13, %v292_v49 }
 0x154   : > { %v412_v51 = vpop.f32.mrf.mxu1 }
 0x155   : > { %v426_v52 = vadd.f32 %v422_v50, %v412_v51 }
 0x157   : > { %430 = vst.msk [vmem:[%s154_s17 + $0x8] sm:$0xff] %vm298_vm13, %v426_v52 }
 0x15a   : > { %v295_v53 = vpop.f32.mrf.mxu2  ;;  %v423_v54 = vld [vmem:[%s154_s17 + $0x10] sm:$0xff] }
 0x15b   : > { %302 = vst.msk [vmem:[%s154_s17 + $0x18] sm:$0xff] %vm298_vm13, %v295_v53 }
 0x15c   : > { %v415_v55 = vpop.f32.mrf.mxu1 }
 0x15d   : > { %v427_v56 = vadd.f32 %v423_v54, %v415_v55 }
 0x15f   : > { %431 = vst.msk [vmem:[%s154_s17 + $0x10] sm:$0xff] %vm298_vm13, %v427_v56 }
 0x162   : > { %v424_v57 = vld [vmem:[%s154_s17 + $0x18] sm:$0xff] }
 0x164   : > { %v418_v58 = vpop.f32.mrf.mxu1 }
 0x165   : > { %v428_v59 = vadd.f32 %v424_v57, %v418_v58 }
 0x167   : > { %432 = vst.msk [vmem:[%s154_s17 + $0x18] sm:$0xff] %vm298_vm13, %v428_v59 }
 0x168   : > { %722 = shalt.err (!%p719_p13)
}
 0x169   : > { %s783_s5 = smov 128   ;;  %s784_s12 = smov 8  }
 0x16a   : > { %599 = dma.vmem_to_hbm [thread:$0]  (%p846_p9), %s449_s25, 512, %s451_s26, %s434_s27, %s783_s5, %s783_s5, %s784_s12  }
 0x16b PF: > { %s465_s13 = sand.u32 1, %s757_s6   ;;  %p606_p0 = pnand %p541_p12, %p853_p11 }
 0x16c   : > { %s466_s15 = scalar_lea.sflag [#allocation4], %s465_s13 }
 0x16d   : > { %p607_p1 = pneg %p606_p0 }
 0x16f   : > { %752 = dma.done.wait (%p607_p1), %s466_s15, 512  }
 0x170   : > { %754 = vsyncadd (%p607_p1), %s466_s15, 4294966784  ;;  %s17_s11 = sadd.s32 1, %s777_s11   ;;  %s989_s6 = smov %s761_s7 }
 0x171   : > { %p14_p2 = scmp.ge.s32.totalorder %s17_s11, 4   ;;  %s990_s7 = smov %s765_s8 }
 0x172   : > { %s991_s8 = smov %s851_s20  ;;  %s992_s9 = smov %s773_s10 }
 0x173   : > { %s993_s10 = smov %s995_s14  ;;  %16 = sbr.rel (!%p14_p2) target bundleno = 6 (0x6), region = 72 }
 0x178   :  { %472 = vsyncpa [#allocation3], 1 }
 0x179   :  { %474 = vsyncpa [#allocation3 + $0x1], 1 }
 0x17a   :  { %475 = vsyncpa [#allocation4], 1 }
 0x17b   :  { %477 = vsyncpa [#allocation4 + $0x1], 1 }

</bundles_post_ra>
